<compile_context>
chip_gen: v7x
topology: tpu7x:2x2x1
jax: 0.10.0
libtpu: 0.0.40
codegen_flags: <defaults>
</compile_context>

<pallas_src>
import math
from functools import partial

import jax
import jax.numpy as jnp
from jax.experimental import pallas as pl
from jax.experimental.pallas import tpu as pltpu

EPS = 1e-5
EXPANSION = 4  # Bottleneck expansion


def _round_up(x, m):
    return (x + m - 1) // m * m


def _vmem_limit_bytes():
    """Generation-aware scoped-VMEM budget (v5e/v6e: 128 MiB physical, v7x: 64 MiB)."""
    try:
        cap = int(pltpu.get_tpu_info().vmem_capacity_bytes)
    except Exception:
        cap = 64 * 1024 * 1024
    return int(min(96 * 1024 * 1024, max(32 * 1024 * 1024, cap * 3 // 4)))


VMEM_LIMIT = _vmem_limit_bytes()


def _pick_tn(npad):
    # Split Cout into 2 parallel tiles when possible so both v7x TensorCores get work.
    if npad >= 256 and npad % 256 == 0:
        return npad // 2
    return npad


def _pick_tk(kp):
    # K always fits a single step at this backbone's sizes; fallback for large K.
    if kp <= 2048:
        return kp
    for tk in (2048, 1024, 512, 256, 128):
        if kp % tk == 0:
            return tk
    return 128


# ---------------------------------------------------------------------------
# Pallas kernels
# ---------------------------------------------------------------------------
def _mm_kernel(*refs, relu, has_res):
    """bf16 matmul with fp32 accumulator initialized from the bias, fused residual add + ReLU."""
    if has_res:
        a_ref, b_ref, t_ref, r_ref, o_ref, acc_ref = refs
    else:
        a_ref, b_ref, t_ref, o_ref, acc_ref = refs
        r_ref = None

    k = pl.program_id(2)

    @pl.when(k == 0)
    def _():
        acc_ref[...] = jnp.broadcast_to(t_ref[...], acc_ref.shape)

    acc_ref[...] += jnp.dot(a_ref[...], b_ref[...], preferred_element_type=jnp.float32)

    @pl.when(k == pl.num_programs(2) - 1)
    def _():
        out = acc_ref[...]
        if r_ref is not None:
            out = out + r_ref[...].astype(jnp.float32)
        if relu:
            out = jnp.maximum(out, 0.0)
        o_ref[...] = out.astype(o_ref.dtype)


def _conv3x3_kernel(a_ref, w_ref, t_ref, o_ref, acc_ref, *, offs, q, relu):
    """Fused-im2col 3x3/stride-1 conv: the padded activation rows live in VMEM; tap (i,j) is the
    same rows shifted by a constant offset, accumulated as 9 small MXU matmuls into a
    bias-initialized fp32 accumulator."""
    acc_ref[...] = jnp.broadcast_to(t_ref[...], acc_ref.shape)
    for t, off in enumerate(offs):
        acc_ref[...] += jnp.dot(a_ref[pl.ds(off, q), :], w_ref[t],
                                preferred_element_type=jnp.float32)
    out = acc_ref[...]
    if relu:
        out = jnp.maximum(out, 0.0)
    o_ref[...] = out.astype(o_ref.dtype)


# ---------------------------------------------------------------------------
# Conv wrappers
# ---------------------------------------------------------------------------
def matmul_bias(a, w_pad, b_pad, k_real, cout, residual=None, relu=False):
    """out[:M,:cout] = relu?((a @ w) + bias (+ residual)).  a:(M,K) bf16, w prepadded (Kp,Np) bf16."""
    M, K = a.shape
    Kp, Np = w_pad.shape

    Mp = _round_up(M, 16)
    if Mp <= 1024:
        tm = Mp                       # collapse the M grid axis (M is tiny here)
    else:
        Mp = _round_up(M, 256)
        tm = 256
    tn = _pick_tn(Np)
    tk = _pick_tk(Kp)

    if Mp > M or Kp > K:
        a = jnp.pad(a, ((0, Mp - M), (0, Kp - K)))

    in_specs = [
        pl.BlockSpec((tm, tk), lambda i, j, k: (i, k)),
        pl.BlockSpec((tk, tn), lambda i, j, k: (k, j)),
        pl.BlockSpec((1, tn), lambda i, j, k: (0, j)),
    ]
    args = [a, w_pad, b_pad]

    has_res = residual is not None
    if has_res:
        r = residual.astype(jnp.bfloat16)
        rM, rN = r.shape
        if Mp > rM or Np > rN:
            r = jnp.pad(r, ((0, Mp - rM), (0, Np - rN)))
        in_specs.append(pl.BlockSpec((tm, tn), lambda i, j, k: (i, j)))
        args.append(r)

    out = pl.pallas_call(
        partial(_mm_kernel, relu=relu, has_res=has_res),
        out_shape=jax.ShapeDtypeStruct((Mp, Np), jnp.bfloat16),
        grid_spec=pltpu.PrefetchScalarGridSpec(
            num_scalar_prefetch=0,
            grid=(Mp // tm, Np // tn, Kp // tk),
            in_specs=in_specs,
            out_specs=pl.BlockSpec((tm, tn), lambda i, j, k: (i, j)),
            scratch_shapes=[pltpu.VMEM((tm, tn), jnp.float32)]),
        compiler_params=pltpu.CompilerParams(
            dimension_semantics=("parallel", "parallel", "arbitrary"),
            vmem_limit_bytes=VMEM_LIMIT),
    )(*args)
    if Mp > M or Np > cout:
        out = out[:M, :cout]
    return out


def conv_mm(x, prep, relu=False, residual=None):
    """Conv via (im2col+) matmul: used for 1x1 convs (no im2col needed) and the 7x7/s2 stem."""
    N, H, W, Cin = x.shape
    kh, kw = prep["kh"], prep["kw"]
    s, d, p = prep["stride"], prep["dilation"], prep["padding"]
    Ho = (H + 2 * p - d * (kh - 1) - 1) // s + 1
    Wo = (W + 2 * p - d * (kw - 1) - 1) // s + 1

    xp = jnp.pad(x, ((0, 0), (p, p), (p, p), (0, 0))) if p else x
    if kh == 1 and kw == 1:
        a = xp[:, ::s, ::s, :] if s > 1 else xp
    else:
        cols = []
        for i in range(kh):
            for j in range(kw):
                hs, ws = i * d, j * d
                cols.append(xp[:, hs:hs + s * (Ho - 1) + 1:s,
                                ws:ws + s * (Wo - 1) + 1:s, :])
        a = jnp.concatenate(cols, axis=-1)
    a = a.reshape(N * Ho * Wo, kh * kw * Cin)

    cout = prep["cout"]
    res = None if residual is None else residual.reshape(N * Ho * Wo, cout)
    out = matmul_bias(a, prep["w"], prep["b"], prep["k"], cout, residual=res, relu=relu)
    return out.reshape(N, Ho, Wo, cout)


def conv3x3_s1_fused(x, prep, relu=True):
    """3x3 / stride-1 / padding=dilation conv with in-kernel im2col (row-shift trick).

    The spatially padded activation is flattened to rows; for output row q (= flat padded
    position) tap (i,j) reads row q + i*d*Wp + j*d, so no 9x im2col matrix is ever written to
    HBM.  Rows corresponding to padding positions produce garbage output rows that the final
    slice discards (valid output pixels never read outside their own image)."""
    N, H, W, Cin = x.shape
    d = prep["dilation"]
    Hp, Wp = H + 2 * d, W + 2 * d

    xp = jnp.pad(x, ((0, 0), (d, d), (d, d), (0, 0)))
    Q = N * Hp * Wp
    a = xp.reshape(Q, Cin)

    Qo = _round_up(Q, 16)                     # output rows computed (>= valid rows)
    max_off = 2 * d * Wp + 2 * d
    Qa = _round_up(Qo + max_off, 16)          # rows the taps may touch (tail is zero padding)
    a = jnp.pad(a, ((0, Qa - Q), (0, 0)))

    w9, bias = prep["w9"], prep["b"]
    Np_ = w9.shape[-1]
    cout = prep["cout"]
    tn = _pick_tn(Np_)
    offs = tuple(i * d * Wp + j * d for i in range(3) for j in range(3))

    out = pl.pallas_call(
        partial(_conv3x3_kernel, offs=offs, q=Qo, relu=relu),
        out_shape=jax.ShapeDtypeStruct((Qo, Np_), jnp.bfloat16),
        grid_spec=pltpu.PrefetchScalarGridSpec(
            num_scalar_prefetch=0,
            grid=(Np_ // tn,),
            in_specs=[pl.BlockSpec((Qa, Cin), lambda j: (0, 0)),
                      pl.BlockSpec((9, Cin, tn), lambda j: (0, 0, j)),
                      pl.BlockSpec((1, tn), lambda j: (0, j))],
            out_specs=pl.BlockSpec((Qo, tn), lambda j: (0, j)),
            scratch_shapes=[pltpu.VMEM((Qo, tn), jnp.float32)]),
        compiler_params=pltpu.CompilerParams(
            dimension_semantics=("parallel",),
            vmem_limit_bytes=VMEM_LIMIT),
    )(a, w9, bias)

    # Keep only rows corresponding to valid output pixels (h < H, w < W).
    return out[:Q].reshape(N, Hp, Wp, Np_)[:, :H, :W, :cout]


_FUSED_3X3_OK = True


def conv_bn(x, prep, relu=False, residual=None):
    """Dispatch: fused 3x3/s1 path for Bottleneck conv2, tiled-matmul path otherwise."""
    global _FUSED_3X3_OK
    if prep["kind"] == "fused3x3":
        if _FUSED_3X3_OK and residual is None:
            try:
                return conv3x3_s1_fused(x, prep, relu=relu)
            except Exception:
                # TODO(synk): fused-im2col path failed to lower on this toolchain; fall back.
                _FUSED_3X3_OK = False
        mm = dict(kh=3, kw=3, stride=1, dilation=prep["dilation"],
                  padding=prep["dilation"], cout=prep["cout"], k=9 * prep["cin"],
                  w=prep["w9"].reshape(9 * prep["cin"], prep["w9"].shape[-1]), b=prep["b"])
        return conv_mm(x, mm, relu=relu, residual=residual)
    return conv_mm(x, prep, relu=relu, residual=residual)


def maxpool_3x3_s2_p1_ceil(x):
    """MaxPool2d(kernel=3, stride=2, padding=1, ceil_mode=True) as a separable strided max.
    Pure data movement (no MXU work) -> plain JAX; no 3x tap duplication through HBM."""
    N, H, W, C = x.shape

    def out_size(s):
        o = -(-(s + 2 - 3) // 2) + 1          # ceil mode
        if (o - 1) * 2 >= s + 1:              # last window must start inside input+left pad
            o -= 1
        return o

    Ho, Wo = out_size(H), out_size(W)
    Hp, Wp = (Ho - 1) * 2 + 3, (Wo - 1) * 2 + 3
    xp = jnp.pad(x, ((0, 0), (1, Hp - H - 1), (1, Wp - W - 1), (0, 0)),
                 constant_values=-jnp.inf)

    rows = [xp[:, i:i + 2 * (Ho - 1) + 1:2] for i in range(3)]
    v = jnp.maximum(jnp.maximum(rows[0], rows[1]), rows[2])          # (N, Ho, Wp, C)
    cols = [v[:, :, j:j + 2 * (Wo - 1) + 1:2, :] for j in range(3)]
    return jnp.maximum(jnp.maximum(cols[0], cols[1]), cols[2])       # (N, Ho, Wo, C)


# ---------------------------------------------------------------------------
# Parameters: init matches the module __init__ (conv ~ N(0,0.01), BN gamma=1/beta=0/stats 0,1);
# prepare_params folds/pads/casts everything ONCE so the forward pass only moves activations.
# ---------------------------------------------------------------------------
def _make_conv(key, cout, cin, kh, kw):
    return jax.random.normal(key, (cout, cin, kh, kw), jnp.float32) * 0.01


def _make_bn(c):
    scale = jnp.full((c,), 1.0 / math.sqrt(1.0 + EPS), jnp.float32)  # gamma / sqrt(var + eps)
    shift = jnp.zeros((c,), jnp.float32)                             # beta - mean * scale
    return scale, shift


def init_params(layers, key):
    keys = iter(jax.random.split(key, 4 + 4 * (sum(layers) + 4)))
    params = {"conv1": _make_conv(next(keys), 64, 3, 7, 7), "bn1": _make_bn(64)}
    strides = [1, 2, 1, 1]
    dilations = [1, 1, 2, 4]
    filt_sizes = [64, 128, 256, 512]
    inplanes = 64
    segments = []
    for planes, nblk, stride, dilation in zip(filt_sizes, layers, strides, dilations):
        seg = {"blocks": [], "ds": None}
        if stride != 1 or inplanes != planes * EXPANSION or dilation in (2, 4):
            seg["ds"] = {"w": _make_conv(next(keys), planes * EXPANSION, inplanes, 1, 1),
                         "bn": _make_bn(planes * EXPANSION), "stride": stride}
        for b in range(nblk):
            s = stride if b == 0 else 1
            blk = {"w1": _make_conv(next(keys), planes, inplanes, 1, 1), "bn1": _make_bn(planes),
                   "w2": _make_conv(next(keys), planes, planes, 3, 3),   "bn2": _make_bn(planes),
                   "w3": _make_conv(next(keys), planes * EXPANSION, planes, 1, 1),
                   "bn3": _make_bn(planes * EXPANSION),
                   "stride": s, "dilation": dilation}
            seg["blocks"].append(blk)
            inplanes = planes * EXPANSION
        segments.append(seg)
    params["segments"] = segments
    return params


def _prep_conv(w, bn, stride=1, dilation=1, padding=0):
    scale, shift = bn
    cout, cin, kh, kw = w.shape
    prep = {"kh": kh, "kw": kw, "stride": stride, "dilation": dilation,
            "padding": padding, "cin": cin, "cout": cout, "k": kh * kw * cin}
    npad = _round_up(cout, 128)
    prep["b"] = jnp.pad(shift.reshape(1, cout).astype(jnp.float32), ((0, 0), (0, npad - cout)))
    if kh == 3 and kw == 3 and stride == 1:
        prep["kind"] = "fused3x3"
        w9 = jnp.transpose(w, (2, 3, 1, 0)).reshape(9, cin, cout) * scale[None, None, :]
        prep["w9"] = jnp.pad(w9, ((0, 0), (0, 0), (0, npad - cout))).astype(jnp.bfloat16)
    else:
        prep["kind"] = "mm"
        K = kh * kw * cin
        Kp = _round_up(K, 128)
        wm = jnp.transpose(w, (2, 3, 1, 0)).reshape(K, cout) * scale[None, :]
        prep["w"] = jnp.pad(wm, ((0, Kp - K), (0, npad - cout))).astype(jnp.bfloat16)
    return prep


def prepare_params(params):
    prep = {"conv1": _prep_conv(params["conv1"], params["bn1"], stride=2, padding=3)}
    segs = []
    for seg in params["segments"]:
        pseg = {"blocks": [], "ds": None}
        if seg["ds"] is not None:
            pseg["ds"] = _prep_conv(seg["ds"]["w"], seg["ds"]["bn"], stride=seg["ds"]["stride"])
        for blk in seg["blocks"]:
            pseg["blocks"].append({
                "c1": _prep_conv(blk["w1"], blk["bn1"], stride=blk["stride"]),
                "c2": _prep_conv(blk["w2"], blk["bn2"],
                                 dilation=blk["dilation"], padding=blk["dilation"]),
                "c3": _prep_conv(blk["w3"], blk["bn3"]),
            })
        segs.append(pseg)
    prep["segments"] = segs
    return prep


# ---------------------------------------------------------------------------
# Forward pass (matches Deeplab_ResNet_Backbone2.forward, eval-mode BN)
# ---------------------------------------------------------------------------
def backbone_forward(prep, x_nchw, policy=None):
    x = jnp.transpose(x_nchw, (0, 2, 3, 1)).astype(jnp.bfloat16)   # NCHW -> NHWC bf16

    # seed: conv7x7/s2/p3 + BN + ReLU + maxpool3x3/s2/p1 (ceil)
    x = conv_bn(x, prep["conv1"], relu=True)
    x = maxpool_3x3_s2_p1_ceil(x)

    t_idx = 0
    for seg in prep["segments"]:
        for b, blk in enumerate(seg["blocks"]):
            if b == 0 and seg["ds"] is not None:
                residual = conv_bn(x, seg["ds"], relu=False)
            else:
                residual = x

            if policy is not None:
                # NOTE: policy must be host-concrete (eager / numpy), matching eager PyTorch use.
                p = float(policy[t_idx, 0])
                t_idx += 1
                if p == 0.0:
                    x = residual
                    continue
                if p != 1.0:
                    raise ValueError("p = %.2f is incorrect" % p)

            out = conv_bn(x, blk["c1"], relu=True)                        # 1x1 (carries stride)
            out = conv_bn(out, blk["c2"], relu=True)                      # 3x3 dilated, fused im2col
            x = conv_bn(out, blk["c3"], relu=True, residual=residual)     # 1x1 + residual + ReLU
    return jnp.transpose(x.astype(jnp.float32), (0, 3, 1, 2))             # NHWC -> NCHW


# ---------------------------------------------------------------------------
if __name__ == "__main__":
    key = jax.random.PRNGKey(0)
    k_params, k_x = jax.random.split(key)

    layers = [2, 2, 2, 2]  # small Bottleneck config (DeepLab ResNet-101 would be [3,4,23,3])
    params = init_params(layers, k_params)
    prep = prepare_params(params)

    x = jax.random.normal(k_x, (2, 3, 16, 16), jnp.float32)  # NCHW, like the PyTorch module
    out = backbone_forward(prep, x, policy=None)
    out = jax.block_until_ready(out)

    # 16 -> conv1/s2 -> 8 -> maxpool/s2(ceil) -> 5 -> layer2/s2 -> 3 -> (dilated layers) -> 3
    assert out.shape == (2, 512 * EXPANSION, 3, 3), out.shape
    assert bool(jnp.all(jnp.isfinite(out)))
    print("KERNEL_OK")
</pallas_src>

<mosaic_0001>
module attributes {stable_mosaic.version = 11 : i64} {
  func.func @_mm_kernel(%arg0: i32, %arg1: i32, %arg2: i32, %arg3: memref<128x256xbf16, #tpu.memory_space<vmem>>, %arg4: memref<256x128xbf16, #tpu.memory_space<vmem>>, %arg5: memref<1x128xf32, #tpu.memory_space<vmem>>, %arg6: memref<128x128xbf16, #tpu.memory_space<vmem>>, %arg7: memref<128x128xf32, #tpu.memory_space<vmem>>) attributes {dimension_semantics = [#tpu.dimension_semantics<parallel>, #tpu.dimension_semantics<parallel>, #tpu.dimension_semantics<arbitrary>], iteration_bounds = array<i64: 1, 1, 1>, scalar_prefetch = 0 : i64, scratch_operands = 1 : i64, tpu.core_type = #tpu.core_type<tc>, window_params = [{transform_indices = @transform_0, window_bounds = array<i64: 128, 256>}, {transform_indices = @transform_1, window_bounds = array<i64: 256, 128>}, {transform_indices = @transform_2, window_bounds = array<i64: 1, 128>}, {transform_indices = @transform_3, window_bounds = array<i64: 128, 128>}]} {
    %c0_i32 = arith.constant 0 : i32
    %0 = arith.cmpi eq, %arg2, %c0_i32 : i32
    %1 = arith.extui %0 : i1 to i32
    %c0_i32_0 = arith.constant 0 : i32
    %2 = arith.cmpi ne, %1, %c0_i32_0 : i32
    scf.if %2 {
      %c0_10 = arith.constant 0 : index
      %c0_11 = arith.constant 0 : index
      %12 = vector.load %arg5[%c0_10, %c0_11] : memref<1x128xf32, #tpu.memory_space<vmem>>, vector<1x128xf32>
      %13 = vector.shape_cast %12 : vector<1x128xf32> to vector<1x128xf32>
      %14 = vector.broadcast %13 : vector<1x128xf32> to vector<128x128xf32>
      %c0_12 = arith.constant 0 : index
      %c0_13 = arith.constant 0 : index
      %15 = vector.load %arg7[%c0_12, %c0_13] : memref<128x128xf32, #tpu.memory_space<vmem>>, vector<128x128xf32>
      tpu.vector_store %arg7[%c0_12, %c0_13], %14 {strides = array<i32>} : memref<128x128xf32, #tpu.memory_space<vmem>>, vector<128x128xf32>,
    } else {
    }
    %c0 = arith.constant 0 : index
    %c0_1 = arith.constant 0 : index
    %3 = vector.load %arg7[%c0, %c0_1] : memref<128x128xf32, #tpu.memory_space<vmem>>, vector<128x128xf32>
    %c0_2 = arith.constant 0 : index
    %c0_3 = arith.constant 0 : index
    %4 = vector.load %arg3[%c0_2, %c0_3] : memref<128x256xbf16, #tpu.memory_space<vmem>>, vector<128x256xbf16>
    %c0_4 = arith.constant 0 : index
    %c0_5 = arith.constant 0 : index
    %5 = vector.load %arg4[%c0_4, %c0_5] : memref<256x128xbf16, #tpu.memory_space<vmem>>, vector<256x128xbf16>
    %cst = arith.constant dense<0.000000e+00> : vector<128x128xf32>
    %6 = tpu.matmul %4, %5, %cst {dimension_numbers = #tpu.dot_dimension_numbers<[1], [0], [0], [1], [0, 0, 1, 1], [], []>} : vector<128x256xbf16>, vector<256x128xbf16>, vector<128x128xf32> -> vector<128x128xf32>
    %7 = arith.addf %3, %6 : vector<128x128xf32>
    %c0_6 = arith.constant 0 : index
    %c0_7 = arith.constant 0 : index
    %8 = vector.load %arg7[%c0_6, %c0_7] : memref<128x128xf32, #tpu.memory_space<vmem>>, vector<128x128xf32>
    tpu.vector_store %arg7[%c0_6, %c0_7], %7 {strides = array<i32>} : memref<128x128xf32, #tpu.memory_space<vmem>>, vector<128x128xf32>,
    %c0_i32_8 = arith.constant 0 : i32
    %9 = arith.cmpi eq, %arg2, %c0_i32_8 : i32
    %10 = arith.extui %9 : i1 to i32
    %c0_i32_9 = arith.constant 0 : i32
    %11 = arith.cmpi ne, %10, %c0_i32_9 : i32
    scf.if %11 {
      %c0_10 = arith.constant 0 : index
      %c0_11 = arith.constant 0 : index
      %12 = vector.load %arg7[%c0_10, %c0_11] : memref<128x128xf32, #tpu.memory_space<vmem>>, vector<128x128xf32>
      %cst_12 = arith.constant 0.000000e+00 : f32
      %13 = vector.broadcast %cst_12 : f32 to vector<128x128xf32>
      %14 = arith.maximumf %12, %13 : vector<128x128xf32>
      %15 = arith.truncf %14 : vector<128x128xf32> to vector<128x128xbf16>
      %c0_13 = arith.constant 0 : index
      %c0_14 = arith.constant 0 : index
      %16 = vector.load %arg6[%c0_13, %c0_14] : memref<128x128xbf16, #tpu.memory_space<vmem>>, vector<128x128xbf16>
      tpu.vector_store %arg6[%c0_13, %c0_14], %15 {strides = array<i32>} : memref<128x128xbf16, #tpu.memory_space<vmem>>, vector<128x128xbf16>,
    } else {
    }
    return
  }
  func.func @transform_0(%arg0: i32, %arg1: i32, %arg2: i32) -> (i32, i32) {
    %c0_i32 = arith.constant 0 : i32
    return %arg0, %arg2 : i32, i32
  }
  func.func @transform_1(%arg0: i32, %arg1: i32, %arg2: i32) -> (i32, i32) {
    %c0_i32 = arith.constant 0 : i32
    return %arg2, %arg1 : i32, i32
  }
  func.func @transform_2(%arg0: i32, %arg1: i32, %arg2: i32) -> (i32, i32) {
    %c0_i32 = arith.constant 0 : i32
    %c0_i32_0 = arith.constant 0 : i32
    return %c0_i32, %arg1 : i32, i32
  }
  func.func @transform_3(%arg0: i32, %arg1: i32, %arg2: i32) -> (i32, i32) {
    %c0_i32 = arith.constant 0 : i32
    return %arg0, %arg1 : i32, i32
  }
}

</mosaic_0001>

<bundles_post_ra>
// kernel: tpu_custom_call.1
= control target key start
LH: loop header
LB: loop body
LE: loop exit
PB: predicated region body
PF: predicated region fallthrough
CT: control target
= control target key end

     0   :  { %8 = vsyncpa [#allocation4], 0  ;;  %s974_s0 = inlined_call_operand.hbm [shape: bf16[128,256], index: 0, kind: input, shape index: {}]   ;;  %s975_s1 = inlined_call_operand.hbm [shape: bf16[256,128], index: 1, kind: input, shape index: {}]   ;;  %s976_s2 = inlined_call_operand.vmem [shape: f32[1,128], index: 2, kind: input, shape index: {}]   ;;  %s977_s3 = inlined_call_operand.hbm [shape: bf16[128,128], index: 3, kind: output, shape index: {}]  }
   0x1   :  { %9 = vsyncpa [#allocation7], 0 }
   0x2   :  { %10 = vsyncpa [#allocation5], 0  ;;  %s884_s12 = smov [#allocation3]   ;;  %s812_s16 = scalar_lea.hbm %s974_s0, 2048 }
   0x3   :  { %s16_s13 = sshll.u32 %s884_s12, 4  ;;  %p813_p0 = scmp.ne.s32.totalorder %s974_s0, %s812_s16  ;;  %s17_s13 = int_to_ptr.vmem [resolvable:$true] %s16_s13 }
   0x4   :  { %p816_p1 = scmp.lt.u32.totalorder %s812_s16, %s974_s0 }
   0x6   :  { %p818_p2 = pnand %p816_p1, %p813_p0 }
   0x8   :  { %821 = shalt.err (!%p818_p2)
}
   0x9   :  { %s822_s21 = scalar_lea.vmem %s17_s13, 2048  ;;  %p827_p4 = scmp.lt.s32.totalorder %s17_s13, %s17_s13 }
   0xa   :  { %p823_p3 = scmp.ne.s32.totalorder %s17_s13, %s822_s21  ;;  %p828_p5 = scmp.lt.s32.totalorder %s822_s21, %s822_s21 }
   0xc   :  { %p829_p6 = por %p828_p5, %p827_p4 }
   0xe   :  { %p830_p7 = pnand %p829_p6, %p823_p3 }
  0x10   :  { %833 = shalt.err (!%p830_p7)
}
  0x11   :  { %s885_s22 = smov 128   ;;  %s886_s23 = smov 8  }
  0x12   :  { %22 = dma.hbm_to_vmem [thread:$0]  %s974_s0, 2048, %s17_s13, [#allocation4], %s885_s22, %s885_s22, %s886_s23  }
  0x13   :  { %s887_s26 = smov [#allocation6]   ;;  %s834_s30 = scalar_lea.hbm %s975_s1, 2048 }
  0x14   :  { %s28_s27 = sshll.u32 %s887_s26, 4  ;;  %p835_p8 = scmp.ne.s32.totalorder %s975_s1, %s834_s30  ;;  %s29_s27 = int_to_ptr.vmem [resolvable:$true] %s28_s27 }
  0x15   :  { %p838_p9 = scmp.lt.u32.totalorder %s834_s30, %s975_s1 }
  0x17   :  { %p840_p10 = pnand %p838_p9, %p835_p8 }
  0x19   :  { %843 = shalt.err (!%p840_p10)
}
  0x1a   :  { %s844_s8 = scalar_lea.vmem %s29_s27, 2048  ;;  %p849_p12 = scmp.lt.s32.totalorder %s29_s27, %s29_s27 }
  0x1b   :  { %p845_p11 = scmp.ne.s32.totalorder %s29_s27, %s844_s8  ;;  %p850_p13 = scmp.lt.s32.totalorder %s844_s8, %s844_s8 }
  0x1d   :  { %p851_p0 = por %p850_p13, %p849_p12 }
  0x1f   :  { %p852_p1 = pnand %p851_p0, %p845_p11 }
  0x21   :  { %855 = shalt.err (!%p852_p1)
}
  0x22   :  { %s888_s0 = smov 64   ;;  %s889_s9 = smov 4  }
  0x23   :  { %34 = dma.hbm_to_vmem [thread:$0]  %s975_s1, 2048, %s29_s27, [#allocation7], %s888_s0, %s888_s0, %s889_s9  }
  0x24   :  { %878 = dma.done.wait [#allocation4], 2048  }
  0x25   :  { %879 = vsyncadd [#allocation4], 4294965248 }
  0x26   :  { %880 = dma.done.wait [#allocation7], 2048  }
  0x27   :  { %881 = vsyncadd [#allocation7], 4294965248  ;;  %v772_v0 = vld [vmem:[#allocation6 + $0x40] sm:$0xff]   ;;  %v774_v2 = vld [vmem:[#allocation6 + $0x48] sm:$0xff]  }
  0x28   :  { %v773_v1 = vld [vmem:[#allocation6] sm:$0xff]   ;;  %685 = vmatprep.subr.bf16.mxu0 %v772_v0  ;;  %749 = vmatprep.subr.bf16.mxu1 %v772_v0  ;;  %v775_v3 = vld [vmem:[#allocation6 + $0x8] sm:$0xff]   ;;  %v776_v4 = vld [vmem:[#allocation6 + $0x50] sm:$0xff]  }
  0x29   :  { %686 = vmatpush3.bf16.msra.mxu0 %v773_v1  ;;  %757 = vmatpush3.bf16.msra.mxu1 %v773_v1  ;;  %v777_v5 = vld [vmem:[#allocation6 + $0x10] sm:$0xff]   ;;  %v778_v6 = vld [vmem:[#allocation6 + $0x58] sm:$0xff]   ;;  %v780_v8 = vld [vmem:[#allocation6 + $0x60] sm:$0xff]  }
  0x2a   :  { %687 = vmatprep.subr.bf16.mxu0 %v774_v2  ;;  %750 = vmatprep.subr.bf16.mxu1 %v774_v2  ;;  %v779_v7 = vld [vmem:[#allocation6 + $0x18] sm:$0xff]   ;;  %v781_v9 = vld [vmem:[#allocation6 + $0x20] sm:$0xff]   ;;  %v782_v10 = vld [vmem:[#allocation6 + $0x68] sm:$0xff]  }
  0x2b   :  { %v790_v11 = vld [vmem:[#allocation3 + $0x4] ss:$8 sps:$4 sm:$0xff]   ;;  %v784_v14 = vld [vmem:[#allocation6 + $0x70] sm:$0xff]   ;;  %v786_v16 = vld [vmem:[#allocation6 + $0x78] sm:$0xff]  }
  0x2c   :  { %v793_v12 = vld [vmem:[#allocation3 + $0x44] ss:$8 sps:$4 sm:$0xff]   ;;  %343 = vmatprep.mubr.bf16.mxu0 %v790_v11  ;;  %v785_v15 = vld [vmem:[#allocation6 + $0x30] sm:$0xff]   ;;  %v787_v17 = vld [vmem:[#allocation6 + $0x38] sm:$0xff]  }
  0x2d   :  { %688 = vmatpush3.bf16.msra.mxu0 %v775_v3  ;;  %758 = vmatpush3.bf16.msra.mxu1 %v775_v3  ;;  %v783_v13 = vld [vmem:[#allocation6 + $0x28] sm:$0xff]   ;;  %v794_v20 = vld [vmem:[#allocation3 + $0x14] ss:$8 sps:$4 sm:$0xff]   ;;  %v798_v22 = vld [vmem:[#allocation3 + $0x10] ss:$8 sps:$4 sm:$0xff]  }
  0x2e   :  { %689 = vmatprep.subr.bf16.mxu0 %v776_v4  ;;  %751 = vmatprep.subr.bf16.mxu1 %v776_v4  ;;  %v788_v18 = vld [vmem:[#allocation3] ss:$8 sps:$4 sm:$0xff]   ;;  %v796_v21 = vld [vmem:[#allocation3 + $0x54] ss:$8 sps:$4 sm:$0xff]   ;;  %v799_v23 = vld [vmem:[#allocation3 + $0x50] ss:$8 sps:$4 sm:$0xff]  }
  0x2f   :  { %375 = vmatprep.mubr.bf16.mxu1 %v793_v12  ;;  %v791_v19 = vld [vmem:[#allocation3 + $0x40] ss:$8 sps:$4 sm:$0xff]   ;;  %v800_v24 = vld [vmem:[#allocation3 + $0x24] ss:$8 sps:$4 sm:$0xff]   ;;  %v806_v28 = vld [vmem:[#allocation3 + $0x34] ss:$8 sps:$4 sm:$0xff]  }
  0x30   :  { %v802_v25 = vld [vmem:[#allocation3 + $0x64] ss:$8 sps:$4 sm:$0xff]   ;;  %v804_v26 = vld [vmem:[#allocation3 + $0x20] ss:$8 sps:$4 sm:$0xff]   ;;  %v808_v29 = vld [vmem:[#allocation3 + $0x74] ss:$8 sps:$4 sm:$0xff]  }
  0x31   :  { %690 = vmatpush3.bf16.msra.mxu0 %v777_v5  ;;  %759 = vmatpush3.bf16.msra.mxu1 %v777_v5  ;;  %v805_v27 = vld [vmem:[#allocation3 + $0x60] ss:$8 sps:$4 sm:$0xff]   ;;  %v810_v30 = vld [vmem:[#allocation3 + $0x30] ss:$8 sps:$4 sm:$0xff]  }
  0x32   :  { %691 = vmatprep.subr.bf16.mxu0 %v778_v6  ;;  %752 = vmatprep.subr.bf16.mxu1 %v778_v6  ;;  %v811_v31 = vld [vmem:[#allocation3 + $0x70] ss:$8 sps:$4 sm:$0xff]   ;;  %v941_v34 = vld [vmem:[%s976_s2] ss:$0 sm:$0xff]  ;;  %s890_s2 = smov [#allocation8]  }
  0x33   :  { %s560_s13 = sshll.u32 %s890_s2, 4  ;;  %s561_s13 = int_to_ptr.vmem [resolvable:$true] %s560_s13 }
  0x34   :  { %s856_s14 = scalar_lea.vmem %s561_s13, 1024  ;;  %p861_p3 = scmp.lt.s32.totalorder %s561_s13, %s561_s13 }
  0x35   :  { %692 = vmatpush3.bf16.msra.mxu0 %v779_v7  ;;  %760 = vmatpush3.bf16.msra.mxu1 %v779_v7  ;;  %p857_p2 = scmp.ne.s32.totalorder %s561_s13, %s856_s14  ;;  %p862_p4 = scmp.lt.s32.totalorder %s856_s14, %s856_s14 }
  0x36   :  { %693 = vmatprep.subr.bf16.mxu0 %v780_v8  ;;  %753 = vmatprep.subr.bf16.mxu1 %v780_v8 }
  0x37   :  { %p863_p5 = por %p862_p4, %p861_p3 }
  0x39   :  { %694 = vmatpush3.bf16.msra.mxu0 %v781_v9  ;;  %761 = vmatpush3.bf16.msra.mxu1 %v781_v9  ;;  %p864_p6 = pnand %p863_p5, %p857_p2 }
  0x3a   :  { %695 = vmatprep.subr.bf16.mxu0 %v782_v10  ;;  %754 = vmatprep.subr.bf16.mxu1 %v782_v10 }
  0x3d   :  { %696 = vmatpush3.bf16.msra.mxu0 %v783_v13  ;;  %762 = vmatpush3.bf16.msra.mxu1 %v783_v13 }
  0x3e   :  { %697 = vmatprep.subr.bf16.mxu0 %v784_v14  ;;  %755 = vmatprep.subr.bf16.mxu1 %v784_v14 }
  0x41   :  { %698 = vmatpush3.bf16.msra.mxu0 %v785_v15  ;;  %763 = vmatpush3.bf16.msra.mxu1 %v785_v15 }
  0x42   :  { %699 = vmatprep.subr.bf16.mxu0 %v786_v16  ;;  %756 = vmatprep.subr.bf16.mxu1 %v786_v16 }
  0x45   :  { %700 = vmatpush3.bf16.msra.mxu0 %v787_v17  ;;  %764 = vmatpush3.bf16.msra.mxu1 %v787_v17 }
  0x48   :  { %344 = vmatmul.mubr.bf16.vlgmr.msra.gmra.mrb[0].mxu0 %v788_v18  ;;  %376 = vmatmul.mubr.bf16.vlgmr.msra.gmra.mrb[0].mxu1 %v791_v19 }
  0x49   :  { %351 = vmatprep.mubr.bf16.mxu0 %v794_v20  ;;  %383 = vmatprep.mubr.bf16.mxu1 %v796_v21 }
  0x50   :  { %352 = vmatmul.mubr.bf16.gmra.mrb[4].mxu0 %v798_v22  ;;  %384 = vmatmul.mubr.bf16.gmra.mrb[4].mxu1 %v799_v23 }
  0x51   :  { %359 = vmatprep.mubr.bf16.mxu0 %v800_v24  ;;  %391 = vmatprep.mubr.bf16.mxu1 %v802_v25 }
  0x58   :  { %360 = vmatmul.mubr.bf16.gmra.mrb[8].mxu0 %v804_v26  ;;  %392 = vmatmul.mubr.bf16.gmra.mrb[8].mxu1 %v805_v27 }
  0x59   :  { %367 = vmatprep.mubr.bf16.mxu0 %v806_v28  ;;  %399 = vmatprep.mubr.bf16.mxu1 %v808_v29 }
  0x60   :  { %368 = vmatmul.mubr.bf16.gmra.mrb[12].mxu0 %v810_v30  ;;  %400 = vmatmul.mubr.bf16.gmra.mrb[12].mxu1 %v811_v31 }
 0x11b   :  { %v701_v32 = vpop.f32.mrb[0].mxu0  ;;  %v725_v33 = vpop.f32.mrb[0].mxu1 }
 0x11c   :  { %v702_v35 = vpop.f32.mrb[1].mxu0  ;;  %v726_v36 = vpop.f32.mrb[1].mxu1 }
 0x11d   :  { %v703_v37 = vadd.f32 %v702_v35, %v701_v32  ;;  %v727_v38 = vadd.f32 %v726_v36, %v725_v33  ;;  %v704_v39 = vpop.f32.mrb[2].mxu0  ;;  %v728_v40 = vpop.f32.mrb[2].mxu1 }
 0x11e   :  { %v705_v41 = vpop.f32.mrb[3].mxu0  ;;  %v729_v42 = vpop.f32.mrb[3].mxu1 }
 0x11f   :  { %v408_v43 = vadd.f32 %v703_v37, %v941_v34  ;;  %v416_v44 = vadd.f32 %v727_v38, %v941_v34  ;;  %v706_v45 = vadd.f32 %v705_v41, %v704_v39  ;;  %v730_v46 = vadd.f32 %v729_v42, %v728_v40 }
 0x121   :  { %v409_v47 = vadd.f32 %v706_v45, %v941_v34  ;;  %v417_v48 = vadd.f32 %v730_v46, %v941_v34  ;;  %v459_v49 = vmax.f32 %v408_v43, 0.0  ;;  %v467_v50 = vmax.f32 %v416_v44, 0.0 }
 0x123   :  { %v460_v51 = vmax.f32 %v409_v47, 0.0  ;;  %v468_v52 = vmax.f32 %v417_v48, 0.0  ;;  %v707_v53 = vpop.f32.mrb[4].mxu0  ;;  %v731_v54 = vpop.f32.mrb[4].mxu1 }
 0x124   :  { %v708_v55 = vpop.f32.mrb[5].mxu0  ;;  %v732_v56 = vpop.f32.mrb[5].mxu1 }
 0x125   :  { %v641_v57 = vpack.c.bf16 %v460_v51, %v459_v49  ;;  %v661_v58 = vpack.c.bf16 %v468_v52, %v467_v50  ;;  %v709_v59 = vadd.f32 %v708_v55, %v707_v53  ;;  %v733_v60 = vadd.f32 %v732_v56, %v731_v54  ;;  %v710_v61 = vpop.f32.mrb[6].mxu0  ;;  %v734_v62 = vpop.f32.mrb[6].mxu1 }
 0x126   :  { %v711_v63 = vpop.f32.mrb[7].mxu0  ;;  %v735_v0 = vpop.f32.mrb[7].mxu1 }
 0x127   :  { %642 = vst [vmem:[#allocation8] sm:$0xff] %v641_v57   ;;  %681 = vst [vmem:[#allocation8 + $0x20] sm:$0xff] %v661_v58   ;;  %v410_v1 = vadd.f32 %v709_v59, %v941_v34  ;;  %v418_v2 = vadd.f32 %v733_v60, %v941_v34  ;;  %v712_v3 = vadd.f32 %v711_v63, %v710_v61 }
 0x128   :  { %v736_v4 = vadd.f32 %v735_v0, %v734_v62 }
 0x129   :  { %v411_v5 = vadd.f32 %v712_v3, %v941_v34  ;;  %v461_v7 = vmax.f32 %v410_v1, 0.0  ;;  %v469_v8 = vmax.f32 %v418_v2, 0.0 }
 0x12a   :  { %v419_v6 = vadd.f32 %v736_v4, %v941_v34 }
 0x12b   :  { %v462_v9 = vmax.f32 %v411_v5, 0.0  ;;  %v713_v11 = vpop.f32.mrb[8].mxu0  ;;  %v737_v12 = vpop.f32.mrb[8].mxu1 }
 0x12c   :  { %v470_v10 = vmax.f32 %v419_v6, 0.0  ;;  %v714_v13 = vpop.f32.mrb[9].mxu0  ;;  %v738_v14 = vpop.f32.mrb[9].mxu1 }
 0x12d   :  { %v646_v15 = vpack.c.bf16 %v462_v9, %v461_v7  ;;  %v715_v17 = vadd.f32 %v714_v13, %v713_v11  ;;  %v739_v18 = vadd.f32 %v738_v14, %v737_v12  ;;  %v716_v19 = vpop.f32.mrb[10].mxu0  ;;  %v740_v20 = vpop.f32.mrb[10].mxu1 }
 0x12e   :  { %v666_v16 = vpack.c.bf16 %v470_v10, %v469_v8  ;;  %v717_v21 = vpop.f32.mrb[11].mxu0  ;;  %v741_v22 = vpop.f32.mrb[11].mxu1 }
 0x12f   :  { %678 = vst [vmem:[#allocation8 + $0x8] sm:$0xff] %v646_v15   ;;  %v412_v23 = vadd.f32 %v715_v17, %v941_v34  ;;  %v420_v24 = vadd.f32 %v739_v18, %v941_v34  ;;  %v718_v25 = vadd.f32 %v717_v21, %v716_v19  ;;  %v742_v26 = vadd.f32 %v741_v22, %v740_v20 }
 0x130   :  { %682 = vst [vmem:[#allocation8 + $0x28] sm:$0xff] %v666_v16  }
 0x131   :  { %v413_v27 = vadd.f32 %v718_v25, %v941_v34  ;;  %v421_v28 = vadd.f32 %v742_v26, %v941_v34  ;;  %v463_v29 = vmax.f32 %v412_v23, 0.0  ;;  %v471_v30 = vmax.f32 %v420_v24, 0.0 }
 0x133   :  { %v464_v31 = vmax.f32 %v413_v27, 0.0  ;;  %v472_v32 = vmax.f32 %v421_v28, 0.0  ;;  %v719_v33 = vpop.f32.mrb[12].mxu0  ;;  %v743_v35 = vpop.f32.mrb[12].mxu1 }
 0x134   :  { %v720_v36 = vpop.f32.mrb[13].mxu0  ;;  %v744_v37 = vpop.f32.mrb[13].mxu1 }
 0x135   :  { %v651_v38 = vpack.c.bf16 %v464_v31, %v463_v29  ;;  %v671_v39 = vpack.c.bf16 %v472_v32, %v471_v30  ;;  %v721_v40 = vadd.f32 %v720_v36, %v719_v33  ;;  %v745_v41 = vadd.f32 %v744_v37, %v743_v35  ;;  %v722_v42 = vpop.f32.mrb[14].mxu0  ;;  %v746_v43 = vpop.f32.mrb[14].mxu1 }
 0x136   :  { %v723_v44 = vpop.f32.mrb[15].mxu0  ;;  %v747_v45 = vpop.f32.mrb[15].mxu1 }
 0x137   :  { %679 = vst [vmem:[#allocation8 + $0x10] sm:$0xff] %v651_v38   ;;  %683 = vst [vmem:[#allocation8 + $0x30] sm:$0xff] %v671_v39   ;;  %v414_v46 = vadd.f32 %v721_v40, %v941_v34  ;;  %v422_v47 = vadd.f32 %v745_v41, %v941_v34  ;;  %v724_v48 = vadd.f32 %v723_v44, %v722_v42 }
 0x138   :  { %v748_v49 = vadd.f32 %v747_v45, %v746_v43 }
 0x139   :  { %v415_v50 = vadd.f32 %v724_v48, %v941_v34  ;;  %v465_v52 = vmax.f32 %v414_v46, 0.0  ;;  %v473_v53 = vmax.f32 %v422_v47, 0.0 }
 0x13a   :  { %v423_v51 = vadd.f32 %v748_v49, %v941_v34 }
 0x13b   :  { %v466_v54 = vmax.f32 %v415_v50, 0.0 }
 0x13c   :  { %v474_v55 = vmax.f32 %v423_v51, 0.0 }
 0x13d   :  { %v656_v56 = vpack.c.bf16 %v466_v54, %v465_v52 }
 0x13e   :  { %v676_v57 = vpack.c.bf16 %v474_v55, %v473_v53 }
 0x13f   :  { %680 = vst [vmem:[#allocation8 + $0x18] sm:$0xff] %v656_v56  }
 0x140   :  { %684 = vst [vmem:[#allocation8 + $0x38] sm:$0xff] %v676_v57  }
 0x141   :  { %867 = shalt.err (!%p864_p6)
}
 0x142   :  { %s868_s17 = scalar_lea.hbm %s977_s3, 1024 }
 0x143   :  { %p869_p7 = scmp.ne.s32.totalorder %s977_s3, %s868_s17  ;;  %p872_p8 = scmp.lt.u32.totalorder %s868_s17, %s977_s3 }
 0x145   :  { %p874_p9 = pnand %p872_p8, %p869_p7 }
 0x147   :  { %877 = shalt.err (!%p874_p9)
}
 0x148   :  { %566 = dma.vmem_to_hbm [thread:$0]  %s561_s13, 1024, %s977_s3, [#allocation5], %s888_s0, %s888_s0, %s889_s9  }
 0x149   :  { %882 = dma.done.wait [#allocation5], 1024  }
 0x14a   :  { %883 = vsyncadd [#allocation5], 4294966272 }
 0x14b   :  { %570 = vsyncpa [#allocation4], 1 }
 0x14c   :  { %571 = vsyncpa [#allocation7], 1 }
 0x14d   :  { %572 = vsyncpa [#allocation5], 1 }

</bundles_post_ra>
